<compile_context>
chip_gen: v5e
topology: v5e:2x2
jax: 0.10.0
libtpu: 0.0.40
codegen_flags: <defaults>
</compile_context>

<pallas_src>
import numpy as np
import jax
import jax.numpy as jnp
from jax.experimental import pallas as pl
from jax.experimental.pallas import tpu as pltpu

# ----- module hyper-parameters (defaults of CNN3D_S3_T2_GRU) -----
CONV1_OUT, CONV1_K, CONV1_S = 5, (2, 3, 3), (2, 2, 2)
CONV2_OUT, CONV2_K = 5, (1, 3, 3)
CONV3_OUT, CONV3_K = 5, (1, 3, 3)
BN_EPS = 1e-3
GRU_IN, GRU_HID = 45, 10
LIN_IN, LIN_OUT = 10, 2

LANE = 128


def _vmem_specs(n):
    return [pl.BlockSpec(memory_space=pltpu.MemorySpace.VMEM) for _ in range(n)]


# -------------------- the single fused Pallas kernel --------------------

def _fused_forward_kernel(x_ref, w1_ref, s1_ref, w2_ref, s2_ref, w3_ref, s3_ref,
                          wih_ref, bih_ref, whh_ref, bhh_ref, wl_ref, bl_ref,
                          o_ref):
    f32 = jnp.float32
    bf16 = jnp.bfloat16
    B = o_ref.shape[0]
    TB = x_ref.shape[0]
    T = TB // B
    Hd = whh_ref.shape[0]

    # --- conv stack: three banded matmuls; bias+BN folded into W/shift; ReLU ---
    # Activations are lane-dense (padded to multiples of 128); matmul operands
    # are bf16, accumulation / elementwise in f32.
    a = x_ref[...]                                                    # bf16 (T*B, 512)
    a = jnp.maximum(jnp.dot(a, w1_ref[...], preferred_element_type=f32)
                    + s1_ref[...], 0.0).astype(bf16)                  # (T*B, 256)
    a = jnp.maximum(jnp.dot(a, w2_ref[...], preferred_element_type=f32)
                    + s2_ref[...], 0.0).astype(bf16)                  # (T*B, 128)
    feat = jnp.maximum(jnp.dot(a, w3_ref[...], preferred_element_type=f32)
                       + s3_ref[...], 0.0)                            # f32 (T*B, 128)
    # feat rows are time-major (t, b); valid cols 0:45 in (h, w, c) order,
    # padded cols are exactly zero (zero weights + zero shift -> ReLU(0)).

    # --- GRU: all gate input projections for all T steps in ONE matmul, kept
    #     in vregs (no VMEM scratch round-trip). Columns: [r | z | n].
    gi = jnp.dot(feat, wih_ref[...], preferred_element_type=f32) + bih_ref[...]  # (T*B, 3*Hd)

    # --- fully unrolled recurrence (PyTorch gate order [r, z, n], h0 = 0) ---
    whh = whh_ref[...]                                                # (Hd, 3*Hd) hoisted
    bhh = bhh_ref[...]                                                # (1, 3*Hd) hoisted
    h = jnp.zeros((B, Hd), f32)
    for t in range(T):
        g = gi[t * B:(t + 1) * B, :]                                  # (B, 3*Hd)
        hh = jnp.dot(h, whh, preferred_element_type=f32) + bhh        # single MXU op / step
        r = jax.nn.sigmoid(g[:, 0:Hd] + hh[:, 0:Hd])
        z = jax.nn.sigmoid(g[:, Hd:2 * Hd] + hh[:, Hd:2 * Hd])
        n = jnp.tanh(g[:, 2 * Hd:3 * Hd] + r * hh[:, 2 * Hd:3 * Hd])
        h = (1.0 - z) * n + z * h

    # --- classifier: Linear + LogSoftmax(dim=-1) ---
    logits = jnp.dot(h, wl_ref[...], preferred_element_type=f32) + bl_ref[...]
    m = jnp.max(logits, axis=-1, keepdims=True)
    s = logits - m
    o_ref[...] = s - jnp.log(jnp.sum(jnp.exp(s), axis=-1, keepdims=True))


# -------------------- host-side (numpy) parameter folding --------------------

def _bn_fold_np(gamma, beta, rmean, rvar):
    scale = gamma / np.sqrt(rvar + BN_EPS)
    return scale, beta - rmean * scale


def _round_up(n, m=LANE):
    return -(-n // m) * m


def _pad2d(a, rows, cols):
    out = np.zeros((rows, cols), a.dtype)
    out[:a.shape[0], :a.shape[1]] = a
    return out


def _conv1_band_np(w, bias, gamma, beta, rmean, rvar, H, W):
    """Banded matmul matrix for conv1 (stride (2,2,2), Cin=1).
    Input cols j = dz*H*W + h*W + w; output cols m = (ho*Wo + wo)*Cout + co."""
    Co = w.shape[0]
    KD, KH, KW = CONV1_K
    _, SH, SW = CONV1_S
    Ho = (H - KH) // SH + 1
    Wo = (W - KW) // SW + 1
    scale, bshift = _bn_fold_np(gamma, beta, rmean, rvar)
    wb = np.zeros((KD * H * W, Ho * Wo * Co), np.float32)
    seen = set()
    for ho in range(Ho):
        for wo in range(Wo):
            for co in range(Co):
                m = (ho * Wo + wo) * Co + co
                for dz in range(KD):
                    for dy in range(KH):
                        for dx in range(KW):
                            j = dz * H * W + (SH * ho + dy) * W + (SW * wo + dx)
                            assert (j, m) not in seen, "duplicate band entry"
                            seen.add((j, m))
                            wb[j, m] = w[co, 0, dz, dy, dx] * scale[co]
    shift = np.tile(bias * scale + bshift, Ho * Wo).astype(np.float32)
    return wb, shift, Ho, Wo


def _conv_band_np(w, bias, gamma, beta, rmean, rvar, Hi, Wi):
    """Banded matmul matrix for a stride-1 (1,kh,kw) Conv3d.
    Input cols j = (h*Wi + w)*Cin + ci; output cols m = (ho*Wo + wo)*Cout + co."""
    Co, Ci, _, KH, KW = w.shape
    Ho = Hi - KH + 1
    Wo = Wi - KW + 1
    scale, bshift = _bn_fold_np(gamma, beta, rmean, rvar)
    wb = np.zeros((Hi * Wi * Ci, Ho * Wo * Co), np.float32)
    seen = set()
    for ho in range(Ho):
        for wo in range(Wo):
            for co in range(Co):
                m = (ho * Wo + wo) * Co + co
                for dy in range(KH):
                    for dx in range(KW):
                        for ci in range(Ci):
                            j = ((ho + dy) * Wi + (wo + dx)) * Ci + ci
                            assert (j, m) not in seen, "duplicate band entry"
                            seen.add((j, m))
                            wb[j, m] = w[co, ci, 0, dy, dx] * scale[co]
    shift = np.tile(bias * scale + bshift, Ho * Wo).astype(np.float32)
    return wb, shift, Ho, Wo


def prepare_params(params, H, W):
    """One-time host-side weight preparation: fold conv bias + BatchNorm(eval)
    into banded matmul weights, pad to lane multiples, cast big slabs to bf16,
    and re-pack the GRU/Linear weights into kernel-ready layouts."""
    c1 = [np.asarray(p, np.float32) for p in params["conv1"]]
    c2 = [np.asarray(p, np.float32) for p in params["conv2"]]
    c3 = [np.asarray(p, np.float32) for p in params["conv3"]]
    wih, whh, bih, bhh = [np.asarray(p, np.float32) for p in params["gru"]]
    wl, bl = [np.asarray(p, np.float32) for p in params["lin"]]

    w1b, s1, H1, W1 = _conv1_band_np(*c1, H, W)
    w2b, s2, H2, W2 = _conv_band_np(*c2, H1, W1)
    w3b, s3, H3, W3 = _conv_band_np(*c3, H2, W2)
    assert H3 * W3 * CONV3_OUT == GRU_IN

    F0 = w1b.shape[0]                 # = KD*H*W (512 for 16x16)
    F1 = _round_up(w1b.shape[1])      # 245 -> 256
    F2 = _round_up(w2b.shape[1])      # 125 -> 128
    F3 = _round_up(w3b.shape[1])      # 45  -> 128

    w1b_j = jnp.asarray(_pad2d(w1b, F0, F1)).astype(jnp.bfloat16)
    s1_j = jnp.asarray(_pad2d(s1[None, :], 1, F1))
    w2b_j = jnp.asarray(_pad2d(w2b, F1, F2)).astype(jnp.bfloat16)
    s2_j = jnp.asarray(_pad2d(s2[None, :], 1, F2))
    w3b_j = jnp.asarray(_pad2d(w3b, F2, F3)).astype(jnp.bfloat16)
    s3_j = jnp.asarray(_pad2d(s3[None, :], 1, F3))

    # GRU: permute input-projection columns from PyTorch (c,h,w) feature order
    # to our (h,w,c) order, pack the three gates [r|z|n] side-by-side on lanes,
    # and pad the input dim to F3.
    Hd = GRU_HID
    C = CONV3_OUT
    perm = np.array([c * H3 * W3 + h * W3 + w
                     for h in range(H3) for w in range(W3) for c in range(C)])
    wih_p = wih[:, perm]                                  # (3*Hd, 45)
    wih_all = np.zeros((F3, 3 * Hd), np.float32)
    whh_all = np.zeros((Hd, 3 * Hd), np.float32)
    for g in range(3):
        wih_all[:GRU_IN, g * Hd:(g + 1) * Hd] = wih_p[g * Hd:(g + 1) * Hd, :].T
        whh_all[:, g * Hd:(g + 1) * Hd] = whh[g * Hd:(g + 1) * Hd, :].T
    bih_all = bih.reshape(1, 3 * Hd)
    bhh_all = bhh.reshape(1, 3 * Hd)

    return (w1b_j, s1_j, w2b_j, s2_j, w3b_j, s3_j,
            jnp.asarray(wih_all), jnp.asarray(bih_all),
            jnp.asarray(whh_all), jnp.asarray(bhh_all),
            jnp.asarray(np.ascontiguousarray(wl.T)),
            jnp.asarray(bl.reshape(1, -1)))


# -------------------- forward --------------------

@jax.jit
def forward(x, prep):
    """x: (B, H, W, T) as in the PyTorch module; prep from prepare_params()."""
    B, H, W, T = x.shape
    KD = CONV1_K[0]
    SD = CONV1_S[0]
    assert KD == SD, "temporal layout trick assumes kd == stride_d"
    Do = (T - KD) // SD + 1

    # input: (B,H,W,T) -> rows (t_out, b), cols (dz, h, w); bf16 matmul operand
    xt = jnp.transpose(x, (3, 0, 1, 2)).astype(jnp.float32)          # (T, B, H, W)
    xt = xt.reshape(Do, KD, B, H, W).transpose(0, 2, 1, 3, 4)        # (Do, B, KD, H, W)
    x2d = xt.reshape(Do * B, KD * H * W).astype(jnp.bfloat16)

    return pl.pallas_call(
        _fused_forward_kernel,
        out_shape=jax.ShapeDtypeStruct((B, LIN_OUT), jnp.float32),
        in_specs=_vmem_specs(13),
        out_specs=pl.BlockSpec(memory_space=pltpu.MemorySpace.VMEM),
    )(x2d, *prep)


# -------------------- deterministic parameter init --------------------

def _unif(key, shape, scale):
    return jax.random.uniform(key, shape, jnp.float32, -scale, scale)


def init_params(key):
    ks = jax.random.split(key, 24)

    def conv_block(k0, k1, k2, k3, k4, k5, cin, cout, ksize):
        fan_in = cin * ksize[0] * ksize[1] * ksize[2]
        s = fan_in ** -0.5
        w = _unif(k0, (cout, cin) + ksize, s)
        b = _unif(k1, (cout,), s)
        gamma = 1.0 + 0.1 * jax.random.uniform(k2, (cout,), jnp.float32)
        beta = 0.1 * jax.random.normal(k3, (cout,), jnp.float32)
        rmean = 0.05 * jax.random.normal(k4, (cout,), jnp.float32)
        rvar = 1.0 + 0.2 * jax.random.uniform(k5, (cout,), jnp.float32)
        return (w, b, gamma, beta, rmean, rvar)

    params = {}
    params["conv1"] = conv_block(*ks[0:6], 1, CONV1_OUT, CONV1_K)
    params["conv2"] = conv_block(*ks[6:12], CONV1_OUT, CONV2_OUT, CONV2_K)
    params["conv3"] = conv_block(*ks[12:18], CONV2_OUT, CONV3_OUT, CONV3_K)

    sg = GRU_HID ** -0.5
    params["gru"] = (
        _unif(ks[18], (3 * GRU_HID, GRU_IN), sg),    # weight_ih_l0
        _unif(ks[19], (3 * GRU_HID, GRU_HID), sg),   # weight_hh_l0
        _unif(ks[20], (3 * GRU_HID,), sg),           # bias_ih_l0
        _unif(ks[21], (3 * GRU_HID,), sg),           # bias_hh_l0
    )
    sl = LIN_IN ** -0.5
    params["lin"] = (
        _unif(ks[22], (LIN_OUT, LIN_IN), sl),        # linear weight
        _unif(ks[23], (LIN_OUT,), sl),               # linear bias
    )
    return params


if __name__ == "__main__":
    key = jax.random.PRNGKey(0)
    pkey, xkey = jax.random.split(key)
    params = init_params(pkey)

    # Host-side, once-per-params weight folding (not inside the jitted forward).
    prep = prepare_params(params, H=16, W=16)

    # x: (B=2, H=16, W=16, T=8) -> conv stack gives (B,5,4,3,3) -> GRU sequence
    # of length 4 with feature size 5*3*3 = 45 (matches gru_1_input_size).
    x = jax.random.uniform(xkey, (2, 16, 16, 8), jnp.float32)

    out = forward(x, prep)
    out = jax.block_until_ready(out)
    assert out.shape == (2, 2), out.shape
    assert bool(jnp.all(jnp.isfinite(out)))
    # log-softmax rows must sum to 1 in probability space
    assert jnp.allclose(jnp.sum(jnp.exp(out), axis=-1), 1.0, atol=1e-3)
    print("KERNEL_OK")
</pallas_src>

<mosaic_0001>
module attributes {stable_mosaic.version = 11 : i64} {
  func.func @_fused_forward_kernel(%arg0: memref<8x512xbf16, #tpu.memory_space<vmem>>, %arg1: memref<512x256xbf16, #tpu.memory_space<vmem>>, %arg2: memref<1x256xf32, #tpu.memory_space<vmem>>, %arg3: memref<256x128xbf16, #tpu.memory_space<vmem>>, %arg4: memref<1x128xf32, #tpu.memory_space<vmem>>, %arg5: memref<128x128xbf16, #tpu.memory_space<vmem>>, %arg6: memref<1x128xf32, #tpu.memory_space<vmem>>, %arg7: memref<128x30xf32, #tpu.memory_space<vmem>>, %arg8: memref<1x30xf32, #tpu.memory_space<vmem>>, %arg9: memref<10x30xf32, #tpu.memory_space<vmem>>, %arg10: memref<1x30xf32, #tpu.memory_space<vmem>>, %arg11: memref<10x2xf32, #tpu.memory_space<vmem>>, %arg12: memref<1x2xf32, #tpu.memory_space<vmem>>, %arg13: memref<2x2xf32, #tpu.memory_space<vmem>>) attributes {dimension_semantics = [], scalar_prefetch = 0 : i64, scratch_operands = 0 : i64, tpu.core_type = #tpu.core_type<tc>} {
    %c0 = arith.constant 0 : index
    %c0_0 = arith.constant 0 : index
    %0 = vector.load %arg0[%c0, %c0_0] : memref<8x512xbf16, #tpu.memory_space<vmem>>, vector<8x512xbf16>
    %c0_1 = arith.constant 0 : index
    %c0_2 = arith.constant 0 : index
    %1 = vector.load %arg1[%c0_1, %c0_2] : memref<512x256xbf16, #tpu.memory_space<vmem>>, vector<512x256xbf16>
    %cst = arith.constant dense<0.000000e+00> : vector<8x256xf32>
    %2 = tpu.matmul %0, %1, %cst {dimension_numbers = #tpu.dot_dimension_numbers<[1], [0], [0], [1], [0, 0, 1, 1], [], []>} : vector<8x512xbf16>, vector<512x256xbf16>, vector<8x256xf32> -> vector<8x256xf32>
    %c0_3 = arith.constant 0 : index
    %c0_4 = arith.constant 0 : index
    %3 = vector.load %arg2[%c0_3, %c0_4] : memref<1x256xf32, #tpu.memory_space<vmem>>, vector<1x256xf32>
    %4 = vector.broadcast %3 : vector<1x256xf32> to vector<8x256xf32>
    %5 = arith.addf %2, %4 : vector<8x256xf32>
    %cst_5 = arith.constant 0.000000e+00 : f32
    %6 = vector.broadcast %cst_5 : f32 to vector<8x256xf32>
    %7 = arith.maximumf %5, %6 : vector<8x256xf32>
    %8 = arith.truncf %7 : vector<8x256xf32> to vector<8x256xbf16>
    %c0_6 = arith.constant 0 : index
    %c0_7 = arith.constant 0 : index
    %9 = vector.load %arg3[%c0_6, %c0_7] : memref<256x128xbf16, #tpu.memory_space<vmem>>, vector<256x128xbf16>
    %cst_8 = arith.constant dense<0.000000e+00> : vector<8x128xf32>
    %10 = tpu.matmul %8, %9, %cst_8 {dimension_numbers = #tpu.dot_dimension_numbers<[1], [0], [0], [1], [0, 0, 1, 1], [], []>} : vector<8x256xbf16>, vector<256x128xbf16>, vector<8x128xf32> -> vector<8x128xf32>
    %c0_9 = arith.constant 0 : index
    %c0_10 = arith.constant 0 : index
    %11 = vector.load %arg4[%c0_9, %c0_10] : memref<1x128xf32, #tpu.memory_space<vmem>>, vector<1x128xf32>
    %12 = vector.broadcast %11 : vector<1x128xf32> to vector<8x128xf32>
    %13 = arith.addf %10, %12 : vector<8x128xf32>
    %cst_11 = arith.constant 0.000000e+00 : f32
    %14 = vector.broadcast %cst_11 : f32 to vector<8x128xf32>
    %15 = arith.maximumf %13, %14 : vector<8x128xf32>
    %16 = arith.truncf %15 : vector<8x128xf32> to vector<8x128xbf16>
    %c0_12 = arith.constant 0 : index
    %c0_13 = arith.constant 0 : index
    %17 = vector.load %arg5[%c0_12, %c0_13] : memref<128x128xbf16, #tpu.memory_space<vmem>>, vector<128x128xbf16>
    %cst_14 = arith.constant dense<0.000000e+00> : vector<8x128xf32>
    %18 = tpu.matmul %16, %17, %cst_14 {dimension_numbers = #tpu.dot_dimension_numbers<[1], [0], [0], [1], [0, 0, 1, 1], [], []>} : vector<8x128xbf16>, vector<128x128xbf16>, vector<8x128xf32> -> vector<8x128xf32>
    %c0_15 = arith.constant 0 : index
    %c0_16 = arith.constant 0 : index
    %19 = vector.load %arg6[%c0_15, %c0_16] : memref<1x128xf32, #tpu.memory_space<vmem>>, vector<1x128xf32>
    %20 = vector.broadcast %19 : vector<1x128xf32> to vector<8x128xf32>
    %21 = arith.addf %18, %20 : vector<8x128xf32>
    %cst_17 = arith.constant 0.000000e+00 : f32
    %22 = vector.broadcast %cst_17 : f32 to vector<8x128xf32>
    %23 = arith.maximumf %21, %22 : vector<8x128xf32>
    %c0_18 = arith.constant 0 : index
    %c0_19 = arith.constant 0 : index
    %24 = vector.load %arg7[%c0_18, %c0_19] : memref<128x30xf32, #tpu.memory_space<vmem>>, vector<128x30xf32>
    %cst_20 = arith.constant dense<0.000000e+00> : vector<8x30xf32>
    %25 = tpu.matmul %23, %24, %cst_20 {dimension_numbers = #tpu.dot_dimension_numbers<[1], [0], [0], [1], [0, 0, 1, 1], [], []>} : vector<8x128xf32>, vector<128x30xf32>, vector<8x30xf32> -> vector<8x30xf32>
    %c0_21 = arith.constant 0 : index
    %c0_22 = arith.constant 0 : index
    %26 = vector.load %arg8[%c0_21, %c0_22] : memref<1x30xf32, #tpu.memory_space<vmem>>, vector<1x30xf32>
    %27 = vector.broadcast %26 : vector<1x30xf32> to vector<8x30xf32>
    %28 = arith.addf %25, %27 : vector<8x30xf32>
    %c0_23 = arith.constant 0 : index
    %c0_24 = arith.constant 0 : index
    %29 = vector.load %arg9[%c0_23, %c0_24] : memref<10x30xf32, #tpu.memory_space<vmem>>, vector<10x30xf32>
    %c0_25 = arith.constant 0 : index
    %c0_26 = arith.constant 0 : index
    %30 = vector.load %arg10[%c0_25, %c0_26] : memref<1x30xf32, #tpu.memory_space<vmem>>, vector<1x30xf32>
    %cst_27 = arith.constant 0.000000e+00 : f32
    %31 = vector.broadcast %cst_27 : f32 to vector<2x10xf32>
    %32 = vector.extract_strided_slice %28 {offsets = [0, 0], sizes = [2, 30], strides = [1, 1]} : vector<8x30xf32> to vector<2x30xf32>
    %cst_28 = arith.constant dense<0.000000e+00> : vector<2x30xf32>
    %33 = tpu.matmul %31, %29, %cst_28 {dimension_numbers = #tpu.dot_dimension_numbers<[1], [0], [0], [1], [0, 0, 1, 1], [], []>} : vector<2x10xf32>, vector<10x30xf32>, vector<2x30xf32> -> vector<2x30xf32>
    %34 = vector.broadcast %30 : vector<1x30xf32> to vector<2x30xf32>
    %35 = arith.addf %33, %34 : vector<2x30xf32>
    %36 = vector.extract_strided_slice %32 {offsets = [0, 0], sizes = [2, 10], strides = [1, 1]} : vector<2x30xf32> to vector<2x10xf32>
    %37 = vector.extract_strided_slice %35 {offsets = [0, 0], sizes = [2, 10], strides = [1, 1]} : vector<2x30xf32> to vector<2x10xf32>
    %38 = arith.addf %36, %37 : vector<2x10xf32>
    %39 = arith.negf %38 : vector<2x10xf32>
    %40 = math.exp %39 : vector<2x10xf32>
    %cst_29 = arith.constant 1.000000e+00 : f32
    %41 = vector.broadcast %cst_29 : f32 to vector<2x10xf32>
    %42 = arith.addf %41, %40 : vector<2x10xf32>
    %43 = arith.divf %41, %42 : vector<2x10xf32>
    %44 = vector.extract_strided_slice %32 {offsets = [0, 10], sizes = [2, 10], strides = [1, 1]} : vector<2x30xf32> to vector<2x10xf32>
    %45 = vector.extract_strided_slice %35 {offsets = [0, 10], sizes = [2, 10], strides = [1, 1]} : vector<2x30xf32> to vector<2x10xf32>
    %46 = arith.addf %44, %45 : vector<2x10xf32>
    %47 = arith.negf %46 : vector<2x10xf32>
    %48 = math.exp %47 : vector<2x10xf32>
    %cst_30 = arith.constant 1.000000e+00 : f32
    %49 = vector.broadcast %cst_30 : f32 to vector<2x10xf32>
    %50 = arith.addf %49, %48 : vector<2x10xf32>
    %51 = arith.divf %49, %50 : vector<2x10xf32>
    %52 = vector.extract_strided_slice %32 {offsets = [0, 20], sizes = [2, 10], strides = [1, 1]} : vector<2x30xf32> to vector<2x10xf32>
    %53 = vector.extract_strided_slice %35 {offsets = [0, 20], sizes = [2, 10], strides = [1, 1]} : vector<2x30xf32> to vector<2x10xf32>
    %54 = arith.mulf %43, %53 : vector<2x10xf32>
    %55 = arith.addf %52, %54 : vector<2x10xf32>
    %56 = math.tanh %55 : vector<2x10xf32>
    %cst_31 = arith.constant 1.000000e+00 : f32
    %57 = vector.broadcast %cst_31 : f32 to vector<2x10xf32>
    %58 = arith.subf %57, %51 : vector<2x10xf32>
    %59 = arith.mulf %58, %56 : vector<2x10xf32>
    %60 = arith.mulf %51, %31 : vector<2x10xf32>
    %61 = arith.addf %59, %60 : vector<2x10xf32>
    %62 = vector.extract_strided_slice %28 {offsets = [2, 0], sizes = [2, 30], strides = [1, 1]} : vector<8x30xf32> to vector<2x30xf32>
    %cst_32 = arith.constant dense<0.000000e+00> : vector<2x30xf32>
    %63 = tpu.matmul %61, %29, %cst_32 {dimension_numbers = #tpu.dot_dimension_numbers<[1], [0], [0], [1], [0, 0, 1, 1], [], []>} : vector<2x10xf32>, vector<10x30xf32>, vector<2x30xf32> -> vector<2x30xf32>
    %64 = vector.broadcast %30 : vector<1x30xf32> to vector<2x30xf32>
    %65 = arith.addf %63, %64 : vector<2x30xf32>
    %66 = vector.extract_strided_slice %62 {offsets = [0, 0], sizes = [2, 10], strides = [1, 1]} : vector<2x30xf32> to vector<2x10xf32>
    %67 = vector.extract_strided_slice %65 {offsets = [0, 0], sizes = [2, 10], strides = [1, 1]} : vector<2x30xf32> to vector<2x10xf32>
    %68 = arith.addf %66, %67 : vector<2x10xf32>
    %69 = arith.negf %68 : vector<2x10xf32>
    %70 = math.exp %69 : vector<2x10xf32>
    %cst_33 = arith.constant 1.000000e+00 : f32
    %71 = vector.broadcast %cst_33 : f32 to vector<2x10xf32>
    %72 = arith.addf %71, %70 : vector<2x10xf32>
    %73 = arith.divf %71, %72 : vector<2x10xf32>
    %74 = vector.extract_strided_slice %62 {offsets = [0, 10], sizes = [2, 10], strides = [1, 1]} : vector<2x30xf32> to vector<2x10xf32>
    %75 = vector.extract_strided_slice %65 {offsets = [0, 10], sizes = [2, 10], strides = [1, 1]} : vector<2x30xf32> to vector<2x10xf32>
    %76 = arith.addf %74, %75 : vector<2x10xf32>
    %77 = arith.negf %76 : vector<2x10xf32>
    %78 = math.exp %77 : vector<2x10xf32>
    %cst_34 = arith.constant 1.000000e+00 : f32
    %79 = vector.broadcast %cst_34 : f32 to vector<2x10xf32>
    %80 = arith.addf %79, %78 : vector<2x10xf32>
    %81 = arith.divf %79, %80 : vector<2x10xf32>
    %82 = vector.extract_strided_slice %62 {offsets = [0, 20], sizes = [2, 10], strides = [1, 1]} : vector<2x30xf32> to vector<2x10xf32>
    %83 = vector.extract_strided_slice %65 {offsets = [0, 20], sizes = [2, 10], strides = [1, 1]} : vector<2x30xf32> to vector<2x10xf32>
    %84 = arith.mulf %73, %83 : vector<2x10xf32>
    %85 = arith.addf %82, %84 : vector<2x10xf32>
    %86 = math.tanh %85 : vector<2x10xf32>
    %cst_35 = arith.constant 1.000000e+00 : f32
    %87 = vector.broadcast %cst_35 : f32 to vector<2x10xf32>
    %88 = arith.subf %87, %81 : vector<2x10xf32>
    %89 = arith.mulf %88, %86 : vector<2x10xf32>
    %90 = arith.mulf %81, %61 : vector<2x10xf32>
    %91 = arith.addf %89, %90 : vector<2x10xf32>
    %92 = vector.extract_strided_slice %28 {offsets = [4, 0], sizes = [2, 30], strides = [1, 1]} : vector<8x30xf32> to vector<2x30xf32>
    %cst_36 = arith.constant dense<0.000000e+00> : vector<2x30xf32>
    %93 = tpu.matmul %91, %29, %cst_36 {dimension_numbers = #tpu.dot_dimension_numbers<[1], [0], [0], [1], [0, 0, 1, 1], [], []>} : vector<2x10xf32>, vector<10x30xf32>, vector<2x30xf32> -> vector<2x30xf32>
    %94 = vector.broadcast %30 : vector<1x30xf32> to vector<2x30xf32>
    %95 = arith.addf %93, %94 : vector<2x30xf32>
    %96 = vector.extract_strided_slice %92 {offsets = [0, 0], sizes = [2, 10], strides = [1, 1]} : vector<2x30xf32> to vector<2x10xf32>
    %97 = vector.extract_strided_slice %95 {offsets = [0, 0], sizes = [2, 10], strides = [1, 1]} : vector<2x30xf32> to vector<2x10xf32>
    %98 = arith.addf %96, %97 : vector<2x10xf32>
    %99 = arith.negf %98 : vector<2x10xf32>
    %100 = math.exp %99 : vector<2x10xf32>
    %cst_37 = arith.constant 1.000000e+00 : f32
    %101 = vector.broadcast %cst_37 : f32 to vector<2x10xf32>
    %102 = arith.addf %101, %100 : vector<2x10xf32>
    %103 = arith.divf %101, %102 : vector<2x10xf32>
    %104 = vector.extract_strided_slice %92 {offsets = [0, 10], sizes = [2, 10], strides = [1, 1]} : vector<2x30xf32> to vector<2x10xf32>
    %105 = vector.extract_strided_slice %95 {offsets = [0, 10], sizes = [2, 10], strides = [1, 1]} : vector<2x30xf32> to vector<2x10xf32>
    %106 = arith.addf %104, %105 : vector<2x10xf32>
    %107 = arith.negf %106 : vector<2x10xf32>
    %108 = math.exp %107 : vector<2x10xf32>
    %cst_38 = arith.constant 1.000000e+00 : f32
    %109 = vector.broadcast %cst_38 : f32 to vector<2x10xf32>
    %110 = arith.addf %109, %108 : vector<2x10xf32>
    %111 = arith.divf %109, %110 : vector<2x10xf32>
    %112 = vector.extract_strided_slice %92 {offsets = [0, 20], sizes = [2, 10], strides = [1, 1]} : vector<2x30xf32> to vector<2x10xf32>
    %113 = vector.extract_strided_slice %95 {offsets = [0, 20], sizes = [2, 10], strides = [1, 1]} : vector<2x30xf32> to vector<2x10xf32>
    %114 = arith.mulf %103, %113 : vector<2x10xf32>
    %115 = arith.addf %112, %114 : vector<2x10xf32>
    %116 = math.tanh %115 : vector<2x10xf32>
    %cst_39 = arith.constant 1.000000e+00 : f32
    %117 = vector.broadcast %cst_39 : f32 to vector<2x10xf32>
    %118 = arith.subf %117, %111 : vector<2x10xf32>
    %119 = arith.mulf %118, %116 : vector<2x10xf32>
    %120 = arith.mulf %111, %91 : vector<2x10xf32>
    %121 = arith.addf %119, %120 : vector<2x10xf32>
    %122 = vector.extract_strided_slice %28 {offsets = [6, 0], sizes = [2, 30], strides = [1, 1]} : vector<8x30xf32> to vector<2x30xf32>
    %cst_40 = arith.constant dense<0.000000e+00> : vector<2x30xf32>
    %123 = tpu.matmul %121, %29, %cst_40 {dimension_numbers = #tpu.dot_dimension_numbers<[1], [0], [0], [1], [0, 0, 1, 1], [], []>} : vector<2x10xf32>, vector<10x30xf32>, vector<2x30xf32> -> vector<2x30xf32>
    %124 = vector.broadcast %30 : vector<1x30xf32> to vector<2x30xf32>
    %125 = arith.addf %123, %124 : vector<2x30xf32>
    %126 = vector.extract_strided_slice %122 {offsets = [0, 0], sizes = [2, 10], strides = [1, 1]} : vector<2x30xf32> to vector<2x10xf32>
    %127 = vector.extract_strided_slice %125 {offsets = [0, 0], sizes = [2, 10], strides = [1, 1]} : vector<2x30xf32> to vector<2x10xf32>
    %128 = arith.addf %126, %127 : vector<2x10xf32>
    %129 = arith.negf %128 : vector<2x10xf32>
    %130 = math.exp %129 : vector<2x10xf32>
    %cst_41 = arith.constant 1.000000e+00 : f32
    %131 = vector.broadcast %cst_41 : f32 to vector<2x10xf32>
    %132 = arith.addf %131, %130 : vector<2x10xf32>
    %133 = arith.divf %131, %132 : vector<2x10xf32>
    %134 = vector.extract_strided_slice %122 {offsets = [0, 10], sizes = [2, 10], strides = [1, 1]} : vector<2x30xf32> to vector<2x10xf32>
    %135 = vector.extract_strided_slice %125 {offsets = [0, 10], sizes = [2, 10], strides = [1, 1]} : vector<2x30xf32> to vector<2x10xf32>
    %136 = arith.addf %134, %135 : vector<2x10xf32>
    %137 = arith.negf %136 : vector<2x10xf32>
    %138 = math.exp %137 : vector<2x10xf32>
    %cst_42 = arith.constant 1.000000e+00 : f32
    %139 = vector.broadcast %cst_42 : f32 to vector<2x10xf32>
    %140 = arith.addf %139, %138 : vector<2x10xf32>
    %141 = arith.divf %139, %140 : vector<2x10xf32>
    %142 = vector.extract_strided_slice %122 {offsets = [0, 20], sizes = [2, 10], strides = [1, 1]} : vector<2x30xf32> to vector<2x10xf32>
    %143 = vector.extract_strided_slice %125 {offsets = [0, 20], sizes = [2, 10], strides = [1, 1]} : vector<2x30xf32> to vector<2x10xf32>
    %144 = arith.mulf %133, %143 : vector<2x10xf32>
    %145 = arith.addf %142, %144 : vector<2x10xf32>
    %146 = math.tanh %145 : vector<2x10xf32>
    %cst_43 = arith.constant 1.000000e+00 : f32
    %147 = vector.broadcast %cst_43 : f32 to vector<2x10xf32>
    %148 = arith.subf %147, %141 : vector<2x10xf32>
    %149 = arith.mulf %148, %146 : vector<2x10xf32>
    %150 = arith.mulf %141, %121 : vector<2x10xf32>
    %151 = arith.addf %149, %150 : vector<2x10xf32>
    %c0_44 = arith.constant 0 : index
    %c0_45 = arith.constant 0 : index
    %152 = vector.load %arg11[%c0_44, %c0_45] : memref<10x2xf32, #tpu.memory_space<vmem>>, vector<10x2xf32>
    %cst_46 = arith.constant dense<0.000000e+00> : vector<2x2xf32>
    %153 = tpu.matmul %151, %152, %cst_46 {dimension_numbers = #tpu.dot_dimension_numbers<[1], [0], [0], [1], [0, 0, 1, 1], [], []>} : vector<2x10xf32>, vector<10x2xf32>, vector<2x2xf32> -> vector<2x2xf32>
    %c0_47 = arith.constant 0 : index
    %c0_48 = arith.constant 0 : index
    %154 = vector.load %arg12[%c0_47, %c0_48] : memref<1x2xf32, #tpu.memory_space<vmem>>, vector<1x2xf32>
    %155 = vector.broadcast %154 : vector<1x2xf32> to vector<2x2xf32>
    %156 = arith.addf %153, %155 : vector<2x2xf32>
    %cst_49 = arith.constant dense<0xFF800000> : vector<2xf32>
    %157 = vector.multi_reduction <maximumf>, %156, %cst_49 [1] : vector<2x2xf32> to vector<2xf32>
    %158 = vector.shape_cast %157 : vector<2xf32> to vector<2x1xf32>
    %159 = vector.broadcast %158 : vector<2x1xf32> to vector<2x2xf32>
    %160 = arith.subf %156, %159 : vector<2x2xf32>
    %161 = math.exp %160 : vector<2x2xf32>
    %cst_50 = arith.constant dense<0.000000e+00> : vector<2xf32>
    %162 = vector.multi_reduction <add>, %161, %cst_50 [1] : vector<2x2xf32> to vector<2xf32>
    %163 = vector.shape_cast %162 : vector<2xf32> to vector<2x1xf32>
    %164 = math.log %163 : vector<2x1xf32>
    %165 = vector.broadcast %164 : vector<2x1xf32> to vector<2x2xf32>
    %166 = arith.subf %160, %165 : vector<2x2xf32>
    %c0_51 = arith.constant 0 : index
    %c0_52 = arith.constant 0 : index
    %167 = vector.load %arg13[%c0_51, %c0_52] : memref<2x2xf32, #tpu.memory_space<vmem>>, vector<2x2xf32>
    tpu.vector_store %arg13[%c0_51, %c0_52], %166 {strides = array<i32>} : memref<2x2xf32, #tpu.memory_space<vmem>>, vector<2x2xf32>,
    return
  }
}

</mosaic_0001>

<bundles_post_ra>
// kernel: forward.1
= control target key start
LH: loop header
LB: loop body
LE: loop exit
PB: predicated region body
PF: predicated region fallthrough
CT: control target
= control target key end

     0   :  { %s2380_s0 = inlined_call_operand.vmem [shape: bf16[8,512], index: 0, kind: input, shape index: {}]   ;;  %s2381_s1 = inlined_call_operand.vmem [shape: bf16[512,256], index: 1, kind: input, shape index: {}]   ;;  %s2382_s2 = inlined_call_operand.vmem [shape: f32[1,256], index: 2, kind: input, shape index: {}]   ;;  %s2383_s3 = inlined_call_operand.vmem [shape: bf16[256,128], index: 3, kind: input, shape index: {}]   ;;  %s2384_s4 = inlined_call_operand.vmem [shape: f32[1,128], index: 4, kind: input, shape index: {}]   ;;  %s2385_s5 = inlined_call_operand.vmem [shape: bf16[128,128], index: 5, kind: input, shape index: {}]   ;;  %s2386_s6 = inlined_call_operand.vmem [shape: f32[1,128], index: 6, kind: input, shape index: {}]   ;;  %s2387_s7 = inlined_call_operand.vmem [shape: f32[128,30], index: 7, kind: input, shape index: {}]   ;;  %s2388_s8 = inlined_call_operand.vmem [shape: f32[1,30], index: 8, kind: input, shape index: {}]   ;;  %s2389_s9 = inlined_call_operand.vmem [shape: f32[10,30], index: 9, kind: input, shape index: {}]   ;;  %s2390_s10 = inlined_call_operand.vmem [shape: f32[1,30], index: 10, kind: input, shape index: {}]   ;;  %s2391_s11 = inlined_call_operand.vmem [shape: f32[10,2], index: 11, kind: input, shape index: {}]   ;;  %s2392_s12 = inlined_call_operand.vmem [shape: f32[1,2], index: 12, kind: input, shape index: {}]   ;;  %s2393_s13 = inlined_call_operand.hbm [shape: f32[2,2], index: 13, kind: output, shape index: {}]  }
   0x1   :  { %v1243_v0 = vld [vmem:[%s2381_s1 + $0x70] sm:$0xf]  ;;  %v1565_v1 = vld [vmem:[%s2381_s1 + $0x74] sm:$0xf0]  ;;  %v1235_v11 = vld [vmem:[%s2381_s1 + $0x60] sm:$0xf] }
   0x2   :  { %v1307_v2 = vld [vmem:[%s2381_s1 + $0xf0] sm:$0xf]  ;;  %v1244_v3 = vor.u32 %v1565_v1, %v1243_v0  ;;  %v1581_v4 = vld [vmem:[%s2381_s1 + $0xf4] sm:$0xf0]  ;;  %v1563_v13 = vld [vmem:[%s2381_s1 + $0x64] sm:$0xf0] }
   0x3   :  { %v1371_v5 = vld [vmem:[%s2381_s1 + $0x170] sm:$0xf]  ;;  %v1597_v6 = vld [vmem:[%s2381_s1 + $0x174] sm:$0xf0]  ;;  %v1308_v7 = vor.u32 %v1581_v4, %v1307_v2  ;;  %v1299_v14 = vld [vmem:[%s2381_s1 + $0xe0] sm:$0xf]  ;;  %v1236_v16 = vor.u32 %v1563_v13, %v1235_v11 }
   0x4   :  { %v1372_v8 = vor.u32 %v1597_v6, %v1371_v5  ;;  %v1435_v9 = vld [vmem:[%s2381_s1 + $0x1f0] sm:$0xf]  ;;  %v1613_v10 = vld [vmem:[%s2381_s1 + $0x1f4] sm:$0xf0]  ;;  %451 = vmatpush.bf16.msra.mxu0 %v1244_v3  ;;  %v1579_v15 = vld [vmem:[%s2381_s1 + $0xe4] sm:$0xf0] }
   0x5   :  { %v1436_v12 = vor.u32 %v1613_v10, %v1435_v9  ;;  %464 = vmatpush.bf16.msra.mxu1 %v1308_v7  ;;  %v1300_v17 = vor.u32 %v1579_v15, %v1299_v14  ;;  %v1363_v18 = vld [vmem:[%s2381_s1 + $0x160] sm:$0xf]  ;;  %v1595_v19 = vld [vmem:[%s2381_s1 + $0x164] sm:$0xf0]  ;;  %v1227_v23 = vld [vmem:[%s2381_s1 + $0x50] sm:$0xf] }
   0x6   :  { %477 = vmatpush.bf16.msra.mxu2 %v1372_v8  ;;  %v1427_v20 = vld [vmem:[%s2381_s1 + $0x1e0] sm:$0xf]  ;;  %v1364_v21 = vor.u32 %v1595_v19, %v1363_v18  ;;  %v1611_v22 = vld [vmem:[%s2381_s1 + $0x1e4] sm:$0xf0]  ;;  %v1561_v24 = vld [vmem:[%s2381_s1 + $0x54] sm:$0xf0] }
   0x7   :  { %490 = vmatpush.bf16.msra.mxu3 %v1436_v12  ;;  %v1428_v25 = vor.u32 %v1611_v22, %v1427_v20  ;;  %v1291_v26 = vld [vmem:[%s2381_s1 + $0xd0] sm:$0xf]  ;;  %v1577_v27 = vld [vmem:[%s2381_s1 + $0xd4] sm:$0xf0]  ;;  %v1228_v29 = vor.u32 %v1561_v24, %v1227_v23  ;;  %v1219_v35 = vld [vmem:[%s2381_s1 + $0x40] sm:$0xf] }
   0x8   :  { %v1355_v28 = vld [vmem:[%s2381_s1 + $0x150] sm:$0xf]  ;;  %452 = vmatpush.bf16.msra.mxu0 %v1236_v16  ;;  %v1593_v30 = vld [vmem:[%s2381_s1 + $0x154] sm:$0xf0]  ;;  %v1292_v33 = vor.u32 %v1577_v27, %v1291_v26  ;;  %v1559_v36 = vld [vmem:[%s2381_s1 + $0x44] sm:$0xf0] }
   0x9   :  { %v1419_v31 = vld [vmem:[%s2381_s1 + $0x1d0] sm:$0xf]  ;;  %v1609_v32 = vld [vmem:[%s2381_s1 + $0x1d4] sm:$0xf0]  ;;  %465 = vmatpush.bf16.msra.mxu1 %v1300_v17  ;;  %v1356_v34 = vor.u32 %v1593_v30, %v1355_v28  ;;  %v1283_v37 = vld [vmem:[%s2381_s1 + $0xc0] sm:$0xf]  ;;  %v1220_v44 = vor.u32 %v1559_v36, %v1219_v35 }
   0xa   :  { %478 = vmatpush.bf16.msra.mxu2 %v1364_v21  ;;  %v1420_v38 = vor.u32 %v1609_v32, %v1419_v31  ;;  %v1575_v39 = vld [vmem:[%s2381_s1 + $0xc4] sm:$0xf0]  ;;  %v1347_v40 = vld [vmem:[%s2381_s1 + $0x140] sm:$0xf]  ;;  %v1211_v47 = vld [vmem:[%s2381_s1 + $0x30] sm:$0xf] }
   0xb   :  { %491 = vmatpush.bf16.msra.mxu3 %v1428_v25  ;;  %v1591_v41 = vld [vmem:[%s2381_s1 + $0x144] sm:$0xf0]  ;;  %v1411_v42 = vld [vmem:[%s2381_s1 + $0x1c0] sm:$0xf]  ;;  %v1284_v45 = vor.u32 %v1575_v39, %v1283_v37  ;;  %v1557_v48 = vld [vmem:[%s2381_s1 + $0x34] sm:$0xf0] }
   0xc   :  { %v1607_v43 = vld [vmem:[%s2381_s1 + $0x1c4] sm:$0xf0]  ;;  %453 = vmatpush.bf16.msra.mxu0 %v1228_v29  ;;  %v1348_v46 = vor.u32 %v1591_v41, %v1347_v40  ;;  %v1275_v49 = vld [vmem:[%s2381_s1 + $0xb0] sm:$0xf]  ;;  %v1573_v51 = vld [vmem:[%s2381_s1 + $0xb4] sm:$0xf0]  ;;  %v1212_v56 = vor.u32 %v1557_v48, %v1211_v47 }
   0xd   :  { %466 = vmatpush.bf16.msra.mxu1 %v1292_v33  ;;  %v1412_v50 = vor.u32 %v1607_v43, %v1411_v42  ;;  %v1339_v52 = vld [vmem:[%s2381_s1 + $0x130] sm:$0xf]  ;;  %v1589_v53 = vld [vmem:[%s2381_s1 + $0x134] sm:$0xf0]  ;;  %v1276_v57 = vor.u32 %v1573_v51, %v1275_v49  ;;  %v1203_v59 = vld [vmem:[%s2381_s1 + $0x20] sm:$0xf] }
   0xe   :  { %479 = vmatpush.bf16.msra.mxu2 %v1356_v34  ;;  %v1403_v54 = vld [vmem:[%s2381_s1 + $0x1b0] sm:$0xf]  ;;  %v1605_v55 = vld [vmem:[%s2381_s1 + $0x1b4] sm:$0xf0]  ;;  %v1340_v58 = vor.u32 %v1589_v53, %v1339_v52  ;;  %v1555_v60 = vld [vmem:[%s2381_s1 + $0x24] sm:$0xf0] }
   0xf   :  { %492 = vmatpush.bf16.msra.mxu3 %v1420_v38  ;;  %v1267_v61 = vld [vmem:[%s2381_s1 + $0xa0] sm:$0xf]  ;;  %v1404_v62 = vor.u32 %v1605_v55, %v1403_v54  ;;  %v1571_v63 = vld [vmem:[%s2381_s1 + $0xa4] sm:$0xf0]  ;;  %v1204_v4 = vor.u32 %v1555_v60, %v1203_v59  ;;  %v1195_v7 = vld [vmem:[%s2381_s1 + $0x10] sm:$0xf] }
  0x10   :  { %454 = vmatpush.bf16.msra.mxu0 %v1220_v44  ;;  %v1331_v0 = vld [vmem:[%s2381_s1 + $0x120] sm:$0xf]  ;;  %v1587_v1 = vld [vmem:[%s2381_s1 + $0x124] sm:$0xf0]  ;;  %v1268_v5 = vor.u32 %v1571_v63, %v1267_v61  ;;  %v1553_v8 = vld [vmem:[%s2381_s1 + $0x14] sm:$0xf0] }
  0x11   :  { %467 = vmatpush.bf16.msra.mxu1 %v1284_v45  ;;  %v1395_v2 = vld [vmem:[%s2381_s1 + $0x1a0] sm:$0xf]  ;;  %v1603_v3 = vld [vmem:[%s2381_s1 + $0x1a4] sm:$0xf0]  ;;  %v1332_v6 = vor.u32 %v1587_v1, %v1331_v0  ;;  %v1259_v9 = vld [vmem:[%s2381_s1 + $0x90] sm:$0xf]  ;;  %v1196_v16 = vor.u32 %v1553_v8, %v1195_v7 }
  0x12   :  { %480 = vmatpush.bf16.msra.mxu2 %v1348_v46  ;;  %v1396_v10 = vor.u32 %v1603_v3, %v1395_v2  ;;  %v1569_v11 = vld [vmem:[%s2381_s1 + $0x94] sm:$0xf0]  ;;  %v1323_v12 = vld [vmem:[%s2381_s1 + $0x110] sm:$0xf]  ;;  %v1187_v17 = vld [vmem:[%s2381_s1] sm:$0xf] }
  0x13   :  { %493 = vmatpush.bf16.msra.mxu3 %v1412_v50  ;;  %v1585_v13 = vld [vmem:[%s2381_s1 + $0x114] sm:$0xf0]  ;;  %v1387_v14 = vld [vmem:[%s2381_s1 + $0x190] sm:$0xf]  ;;  %v1551_v18 = vld [vmem:[%s2381_s1 + $0x4] sm:$0xf0]  ;;  %v1260_v20 = vor.u32 %v1569_v11, %v1259_v9 }
  0x14   :  { %455 = vmatpush.bf16.msra.mxu0 %v1212_v56  ;;  %v1601_v15 = vld [vmem:[%s2381_s1 + $0x194] sm:$0xf0]  ;;  %v1251_v19 = vld [vmem:[%s2381_s1 + $0x80] sm:$0xf]  ;;  %v1324_v21 = vor.u32 %v1585_v13, %v1323_v12  ;;  %v1567_v22 = vld [vmem:[%s2381_s1 + $0x84] sm:$0xf0]  ;;  %v1188_v32 = vor.u32 %v1551_v18, %v1187_v17 }
  0x15   :  { %468 = vmatpush.bf16.msra.mxu1 %v1276_v57  ;;  %v1315_v23 = vld [vmem:[%s2381_s1 + $0x100] sm:$0xf]  ;;  %v1583_v24 = vld [vmem:[%s2381_s1 + $0x104] sm:$0xf0]  ;;  %v1388_v25 = vor.u32 %v1601_v15, %v1387_v14  ;;  %v1564_v28 = vld [vmem:[%s2381_s1 + $0x74] sm:$0xf]  ;;  %v1252_v37 = vor.u32 %v1567_v22, %v1251_v19 }
  0x16   :  { %481 = vmatpush.bf16.msra.mxu2 %v1340_v58  ;;  %v1379_v26 = vld [vmem:[%s2381_s1 + $0x180] sm:$0xf]  ;;  %v1599_v27 = vld [vmem:[%s2381_s1 + $0x184] sm:$0xf0]  ;;  %v1245_v29 = vld [vmem:[%s2381_s1 + $0x78] sm:$0xf0]  ;;  %v1316_v38 = vor.u32 %v1583_v24, %v1315_v23 }
  0x17   :  { %494 = vmatpush.bf16.msra.mxu3 %v1404_v62  ;;  %v1580_v30 = vld [vmem:[%s2381_s1 + $0xf4] sm:$0xf]  ;;  %v46_v31 = vld [vmem:[%s2380_s0 + $0x8] sm:$0xff]  ;;  %v1309_v33 = vld [vmem:[%s2381_s1 + $0xf8] sm:$0xf0]  ;;  %v1380_v42 = vor.u32 %v1599_v27, %v1379_v26  ;;  %v1248_v43 = vor.u32 %v1564_v28, %v1245_v29 }
  0x18   :  { %456 = vmatpush.bf16.msra.mxu0 %v1204_v4  ;;  %v1596_v34 = vld [vmem:[%s2381_s1 + $0x174] sm:$0xf]  ;;  %v1373_v35 = vld [vmem:[%s2381_s1 + $0x178] sm:$0xf0]  ;;  %v121_v36 = vunpack.c.l.b16 %v46_v31  ;;  %v122_v41 = vunpack.c.h.b16 %v46_v31  ;;  %v45_v44 = vld [vmem:[%s2380_s0] sm:$0xff]  ;;  %v1312_v45 = vor.u32 %v1580_v30, %v1309_v33 }
  0x19   :  { %469 = vmatpush.bf16.msra.mxu1 %v1268_v5  ;;  %v1612_v39 = vld [vmem:[%s2381_s1 + $0x1f4] sm:$0xf]  ;;  %v1437_v40 = vld [vmem:[%s2381_s1 + $0x1f8] sm:$0xf0]  ;;  %v1376_v46 = vor.u32 %v1596_v34, %v1373_v35  ;;  %v1562_v47 = vld [vmem:[%s2381_s1 + $0x64] sm:$0xf]  ;;  %v119_v50 = vunpack.c.l.b16 %v45_v44  ;;  %v120_v51 = vunpack.c.h.b16 %v45_v44 }
  0x1a   :  { %482 = vmatpush.bf16.msra.mxu2 %v1332_v6  ;;  %v1237_v48 = vld [vmem:[%s2381_s1 + $0x68] sm:$0xf0]  ;;  %v1578_v49 = vld [vmem:[%s2381_s1 + $0xe4] sm:$0xf]  ;;  %v1440_v52 = vor.u32 %v1612_v39, %v1437_v40  ;;  %v2017_v56 = vpack.c.b16 %v121_v36, %v121_v36  ;;  %v2027_v60 = vpack.c.b16 %v122_v41, %v122_v41  ;;  %v1560_v1 = vld [vmem:[%s2381_s1 + $0x54] sm:$0xf] }
  0x1b   :  { %495 = vmatpush.bf16.msra.mxu3 %v1396_v10  ;;  %v1301_v53 = vld [vmem:[%s2381_s1 + $0xe8] sm:$0xf0]  ;;  %v1594_v54 = vld [vmem:[%s2381_s1 + $0x164] sm:$0xf]  ;;  %v2025_v59 = vpack.c.b16 %v119_v50, %v119_v50  ;;  %v1240_v61 = vor.u32 %v1562_v47, %v1237_v48  ;;  %v2029_v62 = vpack.c.b16 %v120_v51, %v120_v51  ;;  %v1229_v2 = vld [vmem:[%s2381_s1 + $0x58] sm:$0xf0] }
  0x1c   :  { %457 = vmatpush.bf16.msra.mxu0 %v1196_v16  ;;  %v1365_v55 = vld [vmem:[%s2381_s1 + $0x168] sm:$0xf0]  ;;  %v1610_v57 = vld [vmem:[%s2381_s1 + $0x1e4] sm:$0xf]  ;;  %v1304_v63 = vor.u32 %v1578_v49, %v1301_v53  ;;  %v1576_v3 = vld [vmem:[%s2381_s1 + $0xd4] sm:$0xf]  ;;  %v1232_v10 = vor.u32 %v1560_v1, %v1229_v2 }
  0x1d   :  { %470 = vmatpush.bf16.msra.mxu1 %v1260_v20  ;;  %v1429_v58 = vld [vmem:[%s2381_s1 + $0x1e8] sm:$0xf0]  ;;  %v1368_v0 = vor.u32 %v1594_v54, %v1365_v55  ;;  %v1293_v5 = vld [vmem:[%s2381_s1 + $0xd8] sm:$0xf0]  ;;  %v1592_v6 = vld [vmem:[%s2381_s1 + $0x154] sm:$0xf] }
  0x1e   :  { %483 = vmatpush.bf16.msra.mxu2 %v1324_v21  ;;  %v1432_v4 = vor.u32 %v1610_v57, %v1429_v58  ;;  %v1357_v7 = vld [vmem:[%s2381_s1 + $0x158] sm:$0xf0]  ;;  %v1608_v8 = vld [vmem:[%s2381_s1 + $0x1d4] sm:$0xf]  ;;  %v1296_v11 = vor.u32 %v1576_v3, %v1293_v5  ;;  %v1558_v13 = vld [vmem:[%s2381_s1 + $0x44] sm:$0xf] }
  0x1f   :  { %496 = vmatpush.bf16.msra.mxu3 %v1388_v25  ;;  %v1421_v9 = vld [vmem:[%s2381_s1 + $0x1d8] sm:$0xf0]  ;;  %v1360_v12 = vor.u32 %v1592_v6, %v1357_v7  ;;  %v1221_v14 = vld [vmem:[%s2381_s1 + $0x48] sm:$0xf0]  ;;  %v1574_v15 = vld [vmem:[%s2381_s1 + $0xc4] sm:$0xf] }
  0x20   :  { %458 = vmatpush.bf16.msra.mxu0 %v1188_v32  ;;  %v1424_v16 = vor.u32 %v1608_v8, %v1421_v9  ;;  %v1285_v17 = vld [vmem:[%s2381_s1 + $0xc8] sm:$0xf0]  ;;  %v1590_v18 = vld [vmem:[%s2381_s1 + $0x144] sm:$0xf]  ;;  %v1224_v22 = vor.u32 %v1558_v13, %v1221_v14  ;;  %v1556_v23 = vld [vmem:[%s2381_s1 + $0x34] sm:$0xf] }
  0x21   :  { %471 = vmatpush.bf16.msra.mxu1 %v1252_v37  ;;  %v1349_v19 = vld [vmem:[%s2381_s1 + $0x148] sm:$0xf0]  ;;  %v1606_v20 = vld [vmem:[%s2381_s1 + $0x1c4] sm:$0xf]  ;;  %v1288_v24 = vor.u32 %v1574_v15, %v1285_v17  ;;  %v1213_v26 = vld [vmem:[%s2381_s1 + $0x38] sm:$0xf0] }
  0x22   :  { %484 = vmatpush.bf16.msra.mxu2 %v1316_v38  ;;  %v1413_v21 = vld [vmem:[%s2381_s1 + $0x1c8] sm:$0xf0]  ;;  %v1352_v25 = vor.u32 %v1590_v18, %v1349_v19  ;;  %v1572_v27 = vld [vmem:[%s2381_s1 + $0xb4] sm:$0xf]  ;;  %v1277_v28 = vld [vmem:[%s2381_s1 + $0xb8] sm:$0xf0]  ;;  %v1216_v36 = vor.u32 %v1556_v23, %v1213_v26 }
  0x23   :  { %497 = vmatpush.bf16.msra.mxu3 %v1380_v42  ;;  %459 = vmatmul.bf16.vlgmr.msra.gmra.mxu0 %v2025_v59  ;;  %v1416_v29 = vor.u32 %v1606_v20, %v1413_v21  ;;  %v1588_v30 = vld [vmem:[%s2381_s1 + $0x134] sm:$0xf]  ;;  %v1341_v31 = vld [vmem:[%s2381_s1 + $0x138] sm:$0xf0]  ;;  %v1554_v34 = vld [vmem:[%s2381_s1 + $0x24] sm:$0xf]  ;;  %v1280_v38 = vor.u32 %v1572_v27, %v1277_v28 }
  0x24   :  { %503 = vmatpush.bf16.msrb.mxu0 %v1248_v43  ;;  %472 = vmatmul.bf16.vlgmr.msra.gmra.mxu1 %v2029_v62  ;;  %v1604_v32 = vld [vmem:[%s2381_s1 + $0x1b4] sm:$0xf]  ;;  %v1405_v33 = vld [vmem:[%s2381_s1 + $0x1b8] sm:$0xf0]  ;;  %v1205_v35 = vld [vmem:[%s2381_s1 + $0x28] sm:$0xf0]  ;;  %v1344_v39 = vor.u32 %v1588_v30, %v1341_v31 }
  0x25   :  { %516 = vmatpush.bf16.msrb.mxu1 %v1312_v45  ;;  %485 = vmatmul.bf16.vlgmr.msra.gmra.mxu2 %v2017_v56  ;;  %v1570_v37 = vld [vmem:[%s2381_s1 + $0xa4] sm:$0xf] }
  0x26   :  { %529 = vmatpush.bf16.msrb.mxu2 %v1376_v46  ;;  %498 = vmatmul.bf16.vlgmr.msra.gmra.mxu3 %v2027_v60 }
  0x27   :  { %542 = vmatpush.bf16.msrb.mxu3 %v1440_v52 }
  0x28   :  { %504 = vmatpush.bf16.msrb.mxu0 %v1240_v61 }
  0x29   :  { %517 = vmatpush.bf16.msrb.mxu1 %v1304_v63 }
  0x2a   :  { %530 = vmatpush.bf16.msrb.mxu2 %v1368_v0 }
  0x2b   :  { %543 = vmatpush.bf16.msrb.mxu3 %v1432_v4 }
  0x2c   :  { %505 = vmatpush.bf16.msrb.mxu0 %v1232_v10 }
  0x2d   :  { %518 = vmatpush.bf16.msrb.mxu1 %v1296_v11 }
  0x2e   :  { %531 = vmatpush.bf16.msrb.mxu2 %v1360_v12 }
  0x2f   :  { %544 = vmatpush.bf16.msrb.mxu3 %v1424_v16 }
  0x30   :  { %506 = vmatpush.bf16.msrb.mxu0 %v1224_v22 }
  0x31   :  { %519 = vmatpush.bf16.msrb.mxu1 %v1288_v24 }
  0x32   :  { %532 = vmatpush.bf16.msrb.mxu2 %v1352_v25 }
  0x33   :  { %18 = vsyncpa [#allocation3], 0  ;;  %545 = vmatpush.bf16.msrb.mxu3 %v1416_v29  ;;  %v1408_v40 = vor.u32 %v1604_v32, %v1405_v33  ;;  %v1269_v41 = vld [vmem:[%s2381_s1 + $0xa8] sm:$0xf0]  ;;  %v1586_v42 = vld [vmem:[%s2381_s1 + $0x124] sm:$0xf]  ;;  %v1208_v46 = vor.u32 %v1554_v34, %v1205_v35 }
  0x34   :  { %v1333_v43 = vld [vmem:[%s2381_s1 + $0x128] sm:$0xf0]  ;;  %v1602_v44 = vld [vmem:[%s2381_s1 + $0x1a4] sm:$0xf]  ;;  %507 = vmatpush.bf16.msrb.mxu0 %v1216_v36  ;;  %v1272_v47 = vor.u32 %v1570_v37, %v1269_v41  ;;  %v1552_v49 = vld [vmem:[%s2381_s1 + $0x14] sm:$0xf] }
  0x35   :  { %v1397_v45 = vld [vmem:[%s2381_s1 + $0x1a8] sm:$0xf0]  ;;  %520 = vmatpush.bf16.msrb.mxu1 %v1280_v38  ;;  %v1336_v48 = vor.u32 %v1586_v42, %v1333_v43  ;;  %v1197_v50 = vld [vmem:[%s2381_s1 + $0x18] sm:$0xf0]  ;;  %v1568_v51 = vld [vmem:[%s2381_s1 + $0x94] sm:$0xf] }
  0x36   :  { %533 = vmatpush.bf16.msrb.mxu2 %v1344_v39  ;;  %v1400_v52 = vor.u32 %v1602_v44, %v1397_v45  ;;  %v1261_v53 = vld [vmem:[%s2381_s1 + $0x98] sm:$0xf0]  ;;  %v1584_v54 = vld [vmem:[%s2381_s1 + $0x114] sm:$0xf]  ;;  %v1200_v61 = vor.u32 %v1552_v49, %v1197_v50  ;;  %v1550_v1 = vld [vmem:[%s2381_s1 + $0x4] sm:$0xf] }
  0x37   :  { %546 = vmatpush.bf16.msrb.mxu3 %v1408_v40  ;;  %v1325_v55 = vld [vmem:[%s2381_s1 + $0x118] sm:$0xf0]  ;;  %v1600_v57 = vld [vmem:[%s2381_s1 + $0x194] sm:$0xf]  ;;  %v1264_v63 = vor.u32 %v1568_v51, %v1261_v53  ;;  %v1189_v2 = vld [vmem:[%s2381_s1 + $0x8] sm:$0xf0] }
  0x38   :  { %v1389_v58 = vld [vmem:[%s2381_s1 + $0x198] sm:$0xf0]  ;;  %508 = vmatpush.bf16.msrb.mxu0 %v1208_v46  ;;  %v1328_v0 = vor.u32 %v1584_v54, %v1325_v55  ;;  %v1566_v3 = vld [vmem:[%s2381_s1 + $0x84] sm:$0xf]  ;;  %v1253_v5 = vld [vmem:[%s2381_s1 + $0x88] sm:$0xf0]  ;;  %v1192_v10 = vor.u32 %v1550_v1, %v1189_v2 }
  0x39   :  { %521 = vmatpush.bf16.msrb.mxu1 %v1272_v47  ;;  %v1392_v4 = vor.u32 %v1600_v57, %v1389_v58  ;;  %v1582_v6 = vld [vmem:[%s2381_s1 + $0x104] sm:$0xf]  ;;  %v1317_v7 = vld [vmem:[%s2381_s1 + $0x108] sm:$0xf0]  ;;  %v1256_v11 = vor.u32 %v1566_v3, %v1253_v5  ;;  %v1621_v14 = vld [vmem:[%s2383_s3 + $0x38] sm:$0xff]  ;;  %vm851_vm0 = vcmask 1041408  }
  0x3a   :  { %534 = vmatpush.bf16.msrb.mxu2 %v1336_v48  ;;  %v1598_v8 = vld [vmem:[%s2381_s1 + $0x184] sm:$0xf]  ;;  %v1381_v9 = vld [vmem:[%s2381_s1 + $0x188] sm:$0xf0]  ;;  %v1320_v12 = vor.u32 %v1582_v6, %v1317_v7  ;;  %v1620_v15 = vld [vmem:[%s2383_s3 + $0x30] sm:$0xff]  ;;  %vm847_vm5 = vcmask 80896  }
  0x3b   :  { %547 = vmatpush.bf16.msrb.mxu3 %v1400_v52  ;;  %v1384_v13 = vor.u32 %v1598_v8, %v1381_v9  ;;  %v1619_v16 = vld [vmem:[%s2383_s3 + $0x28] sm:$0xff]  ;;  %v1618_v17 = vld [vmem:[%s2383_s3 + $0x20] sm:$0xff]  ;;  %v1628_v19 = vld [vmem:[%s2383_s3 + $0x70] sm:$0xff] }
  0x3c   :  { %509 = vmatpush.bf16.msrb.mxu0 %v1200_v61  ;;  %v1614_v18 = vld [vmem:[%s2383_s3] sm:$0xff]  ;;  %v1627_v20 = vld [vmem:[%s2383_s3 + $0x68] sm:$0xff]  ;;  %v1625_v23 = vld [vmem:[%s2383_s3 + $0x58] sm:$0xff] }
  0x3d   :  { %522 = vmatpush.bf16.msrb.mxu1 %v1264_v63  ;;  %v1626_v21 = vld [vmem:[%s2383_s3 + $0x60] sm:$0xff]  ;;  %v1624_v25 = vld [vmem:[%s2383_s3 + $0x50] sm:$0xff]  ;;  %v1623_v30 = vld [vmem:[%s2383_s3 + $0x48] sm:$0xff] }
  0x3e   :  { %535 = vmatpush.bf16.msrb.mxu2 %v1328_v0  ;;  %v111_v22 = vld [vmem:[%s2382_s2] sm:$0x3]  ;;  %v1637_v58 = vld [vmem:[%s2385_s5 + $0x38] sm:$0xff]  ;;  %v1636_v61 = vld [vmem:[%s2385_s5 + $0x30] sm:$0xff] }
  0x3f   :  { %548 = vmatpush.bf16.msrb.mxu3 %v1392_v4  ;;  %v113_v24 = vperm.slane %v111_v22, 0  ;;  %v1622_v36 = vld [vmem:[%s2383_s3 + $0x40] sm:$0xff]  ;;  %v114_v42 = vperm.slane %v111_v22, 1  ;;  %v1635_v63 = vld [vmem:[%s2385_s5 + $0x28] sm:$0xff]  ;;  %v1633_v1 = vld [vmem:[%s2385_s5 + $0x18] sm:$0xff] }
  0x40   :  { %510 = vmatpush.bf16.msrb.mxu0 %v1192_v10  ;;  %v1634_v0 = vld [vmem:[%s2385_s5 + $0x20] sm:$0xff]  ;;  %v1632_v2 = vld [vmem:[%s2385_s5 + $0x10] sm:$0xff]  ;;  %v1631_v3 = vld [vmem:[%s2385_s5 + $0x8] sm:$0xff] }
  0x41   :  { %523 = vmatpush.bf16.msrb.mxu1 %v1256_v11  ;;  %v1630_v5 = vld [vmem:[%s2385_s5] sm:$0xff]  ;;  %v816_v6 = vld [vmem:[%s2387_s7 + $0x78] sm:$0xff]  ;;  %v815_v7 = vld [vmem:[%s2387_s7 + $0x70] sm:$0xff] }
  0x42   :  { %536 = vmatpush.bf16.msrb.mxu2 %v1320_v12  ;;  %v814_v9 = vld [vmem:[%s2387_s7 + $0x68] sm:$0xff]  ;;  %v813_v10 = vld [vmem:[%s2387_s7 + $0x60] sm:$0xff]  ;;  %v812_v11 = vld [vmem:[%s2387_s7 + $0x58] sm:$0xff] }
  0x43   :  { %549 = vmatpush.bf16.msrb.mxu3 %v1384_v13  ;;  %511 = vmatmul.bf16.vlgmr.msrb.gmra.mxu0 %v2025_v59  ;;  %v1617_v59 = vld [vmem:[%s2383_s3 + $0x18] sm:$0xff]  ;;  %v811_v12 = vld [vmem:[%s2387_s7 + $0x50] sm:$0xff]  ;;  %v810_v13 = vld [vmem:[%s2387_s7 + $0x48] sm:$0xff] }
  0x44   :  { %691 = vmatpush.bf16.msra.mxu0 %v1621_v14  ;;  %524 = vmatmul.bf16.vlgmr.msrb.gmra.mxu1 %v2029_v62  ;;  %v1629_v62 = vld [vmem:[%s2383_s3 + $0x78] sm:$0xff]  ;;  %v809_v14 = vld [vmem:[%s2387_s7 + $0x40] sm:$0xff] }
  0x45   :  { %537 = vmatmul.bf16.vlgmr.msrb.gmra.mxu2 %v2017_v56  ;;  %v1616_v56 = vld [vmem:[%s2383_s3 + $0x10] sm:$0xff]  ;;  %704 = vmatpush.bf16.msra.mxu1 %v1629_v62 }
  0x46   :  { %550 = vmatmul.bf16.vlgmr.msrb.gmra.mxu3 %v2027_v60  ;;  %v1615_v60 = vld [vmem:[%s2383_s3 + $0x8] sm:$0xff]  ;;  %787 = vmatpush.bf16.msra.mxu2 %v1637_v58  ;;  %s1176_s3 = sshll.u32 %s2393_s13, 4  ;;  %s1177_s3 = int_to_ptr.hbm [resolvable:$true] %s1176_s3 }
  0x47   :  { %821 = vmatpush.msra.mxu3 %v816_v6 }
  0x48   :  { %692 = vmatpush.bf16.msra.mxu0 %v1620_v15  ;;  %v808_v15 = vld [vmem:[%s2387_s7 + $0x38] sm:$0xff] }
  0x49   :  { %705 = vmatpush.bf16.msra.mxu1 %v1628_v19  ;;  %822 = vmatpush.msra.mxu3 %v815_v7 }
  0x4a   :  { %788 = vmatpush.bf16.msra.mxu2 %v1636_v61 }
  0x4b   :  { %823 = vmatpush.msra.mxu3 %v814_v9 }
  0x4c   :  { %693 = vmatpush.bf16.msra.mxu0 %v1619_v16  ;;  %v807_v16 = vld [vmem:[%s2387_s7 + $0x30] sm:$0xff] }
  0x4d   :  { %706 = vmatpush.bf16.msra.mxu1 %v1627_v20  ;;  %824 = vmatpush.msra.mxu3 %v813_v10 }
  0x4e   :  { %789 = vmatpush.bf16.msra.mxu2 %v1635_v63 }
  0x4f   :  { %825 = vmatpush.msra.mxu3 %v812_v11 }
  0x50   :  { %694 = vmatpush.bf16.msra.mxu0 %v1618_v17  ;;  %v806_v17 = vld [vmem:[%s2387_s7 + $0x28] sm:$0xff] }
  0x51   :  { %707 = vmatpush.bf16.msra.mxu1 %v1626_v21  ;;  %826 = vmatpush.msra.mxu3 %v811_v12 }
  0x52   :  { %790 = vmatpush.bf16.msra.mxu2 %v1634_v0 }
  0x53   :  { %827 = vmatpush.msra.mxu3 %v810_v13 }
  0x54   :  { %695 = vmatpush.bf16.msra.mxu0 %v1617_v59  ;;  %v1643_v59 = vld [vmem:[%s2384_s4] ss:$0 sm:$0xff] }
  0x55   :  { %708 = vmatpush.bf16.msra.mxu1 %v1625_v23  ;;  %828 = vmatpush.msra.mxu3 %v809_v14  ;;  %v803_v23 = vld [vmem:[%s2387_s7 + $0x10] sm:$0xff] }
  0x56   :  { %791 = vmatpush.bf16.msra.mxu2 %v1633_v1 }
  0x57   :  { %829 = vmatpush.msra.mxu3 %v808_v15 }
  0x58   :  { %696 = vmatpush.bf16.msra.mxu0 %v1616_v56  ;;  %v805_v56 = vld [vmem:[%s2387_s7 + $0x20] sm:$0xff] }
  0x59   :  { %709 = vmatpush.bf16.msra.mxu1 %v1624_v25  ;;  %830 = vmatpush.msra.mxu3 %v807_v16  ;;  %v801_v25 = vld [vmem:[%s2387_s7] sm:$0xff] }
  0x5a   :  { %792 = vmatpush.bf16.msra.mxu2 %v1632_v2 }
  0x5b   :  { %831 = vmatpush.msra.mxu3 %v806_v17 }
  0x5c   :  { %697 = vmatpush.bf16.msra.mxu0 %v1615_v60  ;;  %v804_v60 = vld [vmem:[%s2387_s7 + $0x18] sm:$0xff] }
  0x5d   :  { %710 = vmatpush.bf16.msra.mxu1 %v1623_v30  ;;  %832 = vmatpush.msra.mxu3 %v805_v56 }
  0x5e   :  { %793 = vmatpush.bf16.msra.mxu2 %v1631_v3 }
  0x5f   :  { %833 = vmatpush.msra.mxu3 %v804_v60 }
  0x60   :  { %698 = vmatpush.bf16.msra.mxu0 %v1614_v18 }
  0x61   :  { %711 = vmatpush.bf16.msra.mxu1 %v1622_v36  ;;  %834 = vmatpush.msra.mxu3 %v803_v23 }
  0x62   :  { %794 = vmatpush.bf16.msra.mxu2 %v1630_v5 }
  0xa0   :  { %v460_v26 = vpop.f32.mrf.mxu0 }
  0xa1   :  { %v461_v27 = vadd.f32 %v460_v26, %v113_v24  ;;  %v473_v28 = vpop.f32.mrf.mxu1  ;;  %v802_v24 = vld [vmem:[%s2387_s7 + $0x8] sm:$0xff] }
  0xa2   :  { %835 = vmatpush.msra.mxu3 %v802_v24  ;;  %v842_v26 = vld [vmem:[%s2389_s9 + $0x8] sm:$0x3] }
  0xa3   :  { %v474_v29 = vadd.f32 %v473_v28, %v461_v27  ;;  %1539 = vmatpush.msk.msrb.mxu0 %vm851_vm0, %v842_v26  ;;  %1542 = vmatpush.msk.msrb.mxu1 %vm851_vm0, %v842_v26  ;;  %v841_v27 = vld [vmem:[%s2389_s9] sm:$0xff]  ;;  %s1703_s9 = smov 108  }
  0xa4   :  { %836 = vmatpush.msra.mxu3 %v801_v25  ;;  %1545 = vmatpush.msk.msrb.mxu2 %vm851_vm0, %v842_v26  ;;  %v1644_v28 = vld [vmem:[%s2386_s6] ss:$0 sm:$0xff] }
  0xa5   :  { %934 = vmatpush.msrb.mxu0 %v841_v27  ;;  %1003 = vmatpush.msrb.mxu1 %v841_v27 }
  0xa6   :  { %1537 = vmatpush.msk.msrb.mxu3 %vm851_vm0, %v842_v26  ;;  %1072 = vmatpush.msrb.mxu2 %v841_v27 }
  0xa8   :  { %v486_v31 = vpop.f32.mrf.mxu2  ;;  %v462_v35 = vpop.f32.mrf.mxu0  ;;  %870 = vmatpush.msrb.mxu3 %v841_v27 }
  0xa9   :  { %v487_v32 = vadd.f32 %v486_v31, %v474_v29  ;;  %v499_v33 = vpop.f32.mrf.mxu3  ;;  %v475_v37 = vpop.f32.mrf.mxu1  ;;  %v2325_v35 = vld [vmem:[%s2390_s10] ss:$0 sm:$0xff]  ;;  %s1705_s10 = smov 118  }
  0xab   :  { %v500_v34 = vadd.f32 %v499_v33, %v487_v32  ;;  %v1702_v33 = vmov 0.0  }
  0xad   :  { %v555_v38 = vmax.f32 %v500_v34, 0.0 }
  0xaf   :  { %v557_v39 = vpack.c.bf16 %v555_v38, %v555_v38  ;;  %v1645_v38 = vld [vmem:[%s2388_s8] ss:$0 sm:$0xff]  ;;  %s1704_s8 = smov 20  }
  0xb0   :  { %v488_v40 = vpop.f32.mrf.mxu2 }
  0xb1   :  { %699 = vmatmul.bf16.vlgmr.msra.gmra.mxu0 %v557_v39  ;;  %v501_v41 = vpop.f32.mrf.mxu3 }
  0xc0   :  { %v512_v43 = vpop.f32.mrf.mxu0 }
  0xc1   :  { %v513_v44 = vadd.f32 %v512_v43, %v114_v42  ;;  %v525_v45 = vpop.f32.mrf.mxu1 }
  0xc3   :  { %v526_v46 = vadd.f32 %v525_v45, %v513_v44 }
  0xc8   :  { %v538_v47 = vpop.f32.mrf.mxu2  ;;  %v514_v50 = vpop.f32.mrf.mxu0 }
  0xc9   :  { %v539_v48 = vadd.f32 %v538_v47, %v526_v46  ;;  %v551_v49 = vpop.f32.mrf.mxu3  ;;  %v527_v51 = vpop.f32.mrf.mxu1 }
  0xcb   :  { %v552_v52 = vadd.f32 %v551_v49, %v539_v48 }
  0xcd   :  { %v556_v53 = vmax.f32 %v552_v52, 0.0 }
  0xcf   :  { %v558_v54 = vpack.c.bf16 %v556_v53, %v556_v53 }
  0xd0   :  { %v540_v55 = vpop.f32.mrf.mxu2 }
  0xd1   :  { %v553_v57 = vpop.f32.mrf.mxu3  ;;  %712 = vmatmul.bf16.vlgmr.msra.gmra.mxu1 %v558_v54 }
 0x12e   :  { %v700_v4 = vpop.f32.mrf.mxu0 }
 0x12f   :  { %v701_v62 = vadd.f32 %v1643_v59, %v700_v4 }
 0x136   :  { %v702_v8 = vpop.f32.mrf.mxu0 }
 0x14e   :  { %v713_v18 = vpop.f32.mrf.mxu1 }
 0x14f   :  { %v714_v19 = vadd.f32 %v713_v18, %v701_v62 }
 0x151   :  { %v717_v20 = vmax.f32 %v714_v19, 0.0 }
 0x153   :  { %v718_v21 = vpack.c.bf16 %v717_v20, %v717_v20 }
 0x155   :  { %795 = vmatmul.bf16.vlgmr.msra.gmra.mxu2 %v718_v21 }
 0x156   :  { %v715_v22 = vpop.f32.mrf.mxu1 }
 0x1d8   :  { %v796_v29 = vpop.f32.mrf.mxu2 }
 0x1d9   :  { %v797_v30 = vadd.f32 %v1644_v28, %v796_v29 }
 0x1db   :  { %v800_v31 = vmax.f32 %v797_v30, 0.0 }
 0x1dd   :  { %837 = vmatmul.f32.vlgmr.msra.gmra.mxu3 %v800_v31 }
 0x1e0   :  { %v798_v32 = vpop.f32.mrf.mxu2 }
 0x1e5   :  { %871 = vmatmul.f32.vlgmr.msrb.gmra.mxu3 %v1702_v33 }
 0x260   :  { %v838_v34 = vpop.f32.mrf.mxu3 }
 0x261   :  { %v2332_v39 = vadd.f32 %v1645_v38, %v838_v34 }
 0x268   :  { %v872_v36 = vpop.f32.mrf.mxu3 }
 0x269   :  { %v873_v37 = vadd.f32 %v2325_v35, %v872_v36 }
 0x26b   :  { %896 = vrot.lane.b32.xlu0 %v873_v37, %s1703_s9  ;;  %v875_v40 = vadd.f32 %v873_v37, %v2332_v39 }
 0x26d   :  { %v1538_v41 = vmul.f32 -1.442695, %v875_v40 }
 0x26f   :  { %1648 = vpow2.f32 %v1538_v41 }
 0x275   :  { %v1649_v42 = vpop.eup %1648 }
 0x276   :  { %v879_v43 = vadd.f32 1.0, %v1649_v42 }
 0x278   :  { %1650 = vrcp.f32 %v879_v43  ;;  %v891_v49 = vand.u32 2147483648, %v879_v43  ;;  %vm885_vm2 = vweird.f32 %v879_v43  ;;  %v889_v50 = vand.u32 2147483647, %v879_v43 }
 0x27a   :  { %v892_v52 = vor.u32 1.1754944e-38, %v891_v49  ;;  %vm890_vm4 = vcmp.eq.f32.partialorder %v889_v50, 8.507059e+37 }
 0x27e   :  { %v1651_v44 = vpop.eup %1650 }
 0x27f   :  { %v881_v45 = vmul.f32 %v1651_v44, %v879_v43  ;;  %vm886_vm1 = vweird.f32 %v1651_v44 }
 0x280   :  { %vm887_vm3 = vmor %vm885_vm2, %vm886_vm1 }
 0x281   :  { %v882_v46 = vsub.f32 1.0, %v881_v45 }
 0x283   :  { %v883_v47 = vmul.f32 %v1651_v44, %v882_v46 }
 0x285   :  { %v884_v48 = vadd.f32 %v1651_v44, %v883_v47 }
 0x287   :  { %v888_v51 = vsel %vm887_vm3, %v1651_v44, %v884_v48  ;;  %vm1155_vm3 = vcmask 9216  }
 0x288   :  { %v893_v54 = vsel %vm890_vm4, %v892_v52, %v888_v51 }
 0x289   :  { %v906_v63 = vsub.f32 1.0, %v893_v54  ;;  %v912_v1 = vmul.f32 0.0, %v893_v54 }
 0x2dd   :  { %v897_v53 = vpop.permute.xlu0 %896 }
 0x2de   :  { %v899_v55 = vmul.f32 %v897_v53, %v893_v54 }
 0x2e0   :  { %901 = vrot.lane.b32.xlu0 %v899_v55, %s1704_s8 }
 0x352   :  { %v902_v57 = vpop.permute.xlu0 %901 }
 0x353   :  { %v904_v58 = vadd.f32 %v902_v57, %v2332_v39 }
 0x355   :  { %1652 = vtanh.f32 %v904_v58 }
 0x35b   :  { %v1653_v61 = vpop.eup %1652 }
 0x35c   :  { %908 = vrot.lane.b32.xlu1 %v1653_v61, %s1705_s10 }
 0x3ce   :  { %v909_v0 = vpop.permute.xlu1 %908 }
 0x3cf   :  { %v911_v2 = vmul.f32 %v909_v0, %v906_v63 }
 0x3d1   :  { %v913_v3 = vadd.f32 %v912_v1, %v911_v2 }
 0x3d3   :  { %915 = vrot.lane.b32.xlu1 %v913_v3, %s1705_s10  ;;  %v978_v60 = vrot.slane %v913_v3, 6 }
 0x445   :  { %v916_v4 = vpop.permute.xlu1 %915 }
 0x446   :  { %1540 = vmatmul.msk.f32.vlgmr.msrb.gmra.mxu0 %vm847_vm5, %v916_v4 }
 0x4c3   :  { %v936_v5 = vpop.f32.mrf.mxu0 }
 0x4c4   :  { %v937_v6 = vadd.f32 %v2325_v35, %v936_v5 }
 0x4c6   :  { %v940_v7 = vrot.slane %v937_v6, 6 }
 0x4c8   :  { %v942_v8 = vadd.f32 %v940_v7, %v2332_v39  ;;  %962 = vrot.lane.b32.xlu2 %v940_v7, %s1703_s9 }
 0x4ca   :  { %v1541_v9 = vmul.f32 -1.442695, %v942_v8 }
 0x4cc   :  { %1654 = vpow2.f32 %v1541_v9 }
 0x4d2   :  { %v1655_v10 = vpop.eup %1654 }
 0x4d3   :  { %v946_v11 = vadd.f32 1.0, %v1655_v10 }
 0x4d5   :  { %1656 = vrcp.f32 %v946_v11  ;;  %v958_v15 = vand.u32 2147483648, %v946_v11  ;;  %v956_v17 = vand.u32 2147483647, %v946_v11  ;;  %vm952_vm7 = vweird.f32 %v946_v11 }
 0x4d7   :  { %v959_v56 = vor.u32 1.1754944e-38, %v958_v15  ;;  %vm957_vm9 = vcmp.eq.f32.partialorder %v956_v17, 8.507059e+37 }
 0x4db   :  { %v1657_v12 = vpop.eup %1656 }
 0x4dc   :  { %v948_v13 = vmul.f32 %v1657_v12, %v946_v11  ;;  %vm953_vm6 = vweird.f32 %v1657_v12 }
 0x4dd   :  { %vm954_vm8 = vmor %vm952_vm7, %vm953_vm6 }
 0x4de   :  { %v949_v14 = vsub.f32 1.0, %v948_v13 }
 0x4e0   :  { %v950_v16 = vmul.f32 %v1657_v12, %v949_v14 }
 0x4e2   :  { %v951_v59 = vadd.f32 %v1657_v12, %v950_v16 }
 0x4e4   :  { %v955_v62 = vsel %vm954_vm8, %v1657_v12, %v951_v59 }
 0x4e5   :  { %v960_v18 = vsel %vm957_vm9, %v959_v56, %v955_v62 }
 0x4e6   :  { %v980_v19 = vmul.f32 %v978_v60, %v960_v18  ;;  %v972_v25 = vsub.f32 1.0, %v960_v18 }
 0x522   :  { %v963_v20 = vpop.permute.xlu2 %962 }
 0x523   :  { %v965_v21 = vmul.f32 %v963_v20, %v960_v18  ;;  %v1121_v20 = vld [vmem:[%s2391_s11 + $0x8] sm:$0x3] }
 0x524   :  { %1548 = vmatpush.msk.msra.mxu3 %vm851_vm0, %v1121_v20 }
 0x525   :  { %967 = vrot.lane.b32.xlu2 %v965_v21, %s1704_s8  ;;  %v1120_v21 = vld [vmem:[%s2391_s11] sm:$0xff]  ;;  %s1706_s11 = smov [#allocation2]  }
 0x526   :  { %1150 = vmatpush.msra.mxu3 %v1120_v21  ;;  %s1174_s2 = sshll.u32 %s1706_s11, 4  ;;  %s1175_s2 = int_to_ptr.vmem [resolvable:$true] %s1174_s2 }
 0x57f   :  { %v968_v22 = vpop.permute.xlu2 %967 }
 0x580   :  { %v970_v23 = vadd.f32 %v968_v22, %v2332_v39 }
 0x582   :  { %1658 = vtanh.f32 %v970_v23 }
 0x588   :  { %v1659_v24 = vpop.eup %1658 }
 0x589   :  { %974 = vrot.lane.b32.xlu0 %v1659_v24, %s1705_s10 }
 0x5fb   :  { %v975_v26 = vpop.permute.xlu0 %974 }
 0x5fc   :  { %v977_v27 = vmul.f32 %v975_v26, %v972_v25 }
 0x5fe   :  { %v981_v28 = vadd.f32 %v980_v19, %v977_v27 }
 0x600   :  { %v983_v29 = vrot.slane %v981_v28, 2  ;;  %v1047_v48 = vrot.slane %v981_v28, 6 }
 0x602   :  { %984 = vrot.lane.b32.xlu1 %v983_v29, %s1705_s10  ;;  %v1647_v29 = vld [vmem:[%s2392_s12] ss:$0 sm:$0xff] }
 0x674   :  { %v985_v30 = vpop.permute.xlu1 %984 }
 0x675   :  { %1543 = vmatmul.msk.f32.vlgmr.msrb.gmra.mxu1 %vm847_vm5, %v985_v30 }
 0x6f2   :  { %v1005_v31 = vpop.f32.mrf.mxu1 }
 0x6f3   :  { %v1006_v32 = vadd.f32 %v2325_v35, %v1005_v31 }
 0x6f5   :  { %v1009_v33 = vrot.slane %v1006_v32, 4 }
 0x6f7   :  { %v1011_v34 = vadd.f32 %v1009_v33, %v2332_v39  ;;  %1031 = vrot.lane.b32.xlu2 %v1009_v33, %s1703_s9 }
 0x6f9   :  { %v1544_v36 = vmul.f32 -1.442695, %v1011_v34 }
 0x6fb   :  { %1660 = vpow2.f32 %v1544_v36 }
 0x701   :  { %v1661_v37 = vpop.eup %1660 }
 0x702   :  { %v1015_v38 = vadd.f32 1.0, %v1661_v37 }
 0x704   :  { %1662 = vrcp.f32 %v1015_v38  ;;  %v1027_v43 = vand.u32 2147483648, %v1015_v38  ;;  %v1025_v45 = vand.u32 2147483647, %v1015_v38  ;;  %vm1021_vm11 = vweird.f32 %v1015_v38 }
 0x706   :  { %v1028_v47 = vor.u32 1.1754944e-38, %v1027_v43  ;;  %vm1026_vm13 = vcmp.eq.f32.partialorder %v1025_v45, 8.507059e+37 }
 0x70a   :  { %v1663_v40 = vpop.eup %1662 }
 0x70b   :  { %v1017_v41 = vmul.f32 %v1663_v40, %v1015_v38  ;;  %vm1022_vm10 = vweird.f32 %v1663_v40 }
 0x70c   :  { %vm1023_vm12 = vmor %vm1021_vm11, %vm1022_vm10 }
 0x70d   :  { %v1018_v42 = vsub.f32 1.0, %v1017_v41 }
 0x70f   :  { %v1019_v44 = vmul.f32 %v1663_v40, %v1018_v42 }
 0x711   :  { %v1020_v46 = vadd.f32 %v1663_v40, %v1019_v44 }
 0x713   :  { %v1024_v49 = vsel %vm1023_vm12, %v1663_v40, %v1020_v46 }
 0x714   :  { %v1029_v50 = vsel %vm1026_vm13, %v1028_v47, %v1024_v49 }
 0x715   :  { %v1049_v51 = vmul.f32 %v1047_v48, %v1029_v50  ;;  %v1041_v58 = vsub.f32 1.0, %v1029_v50 }
 0x751   :  { %v1032_v52 = vpop.permute.xlu2 %1031 }
 0x752   :  { %v1034_v53 = vmul.f32 %v1032_v52, %v1029_v50 }
 0x754   :  { %1036 = vrot.lane.b32.xlu0 %v1034_v53, %s1704_s8 }
 0x7c6   :  { %v1037_v54 = vpop.permute.xlu0 %1036 }
 0x7c7   :  { %v1039_v55 = vadd.f32 %v1037_v54, %v2332_v39 }
 0x7c9   :  { %1664 = vtanh.f32 %v1039_v55 }
 0x7cf   :  { %v1665_v57 = vpop.eup %1664 }
 0x7d0   :  { %1043 = vrot.lane.b32.xlu1 %v1665_v57, %s1705_s10 }
 0x842   :  { %v1044_v61 = vpop.permute.xlu1 %1043 }
 0x843   :  { %v1046_v63 = vmul.f32 %v1044_v61, %v1041_v58 }
 0x845   :  { %v1050_v0 = vadd.f32 %v1049_v51, %v1046_v63 }
 0x847   :  { %v1052_v1 = vrot.slane %v1050_v0, 4  ;;  %v1116_v22 = vrot.slane %v1050_v0, 6 }
 0x849   :  { %1053 = vrot.lane.b32.xlu2 %v1052_v1, %s1705_s10 }
 0x8a3   :  { %v1054_v2 = vpop.permute.xlu2 %1053 }
 0x8a4   :  { %1546 = vmatmul.msk.f32.vlgmr.msrb.gmra.mxu2 %vm847_vm5, %v1054_v2 }
 0x927   :  { %v1074_v3 = vpop.f32.mrf.mxu2 }
 0x928   :  { %v1075_v4 = vadd.f32 %v2325_v35, %v1074_v3 }
 0x92a   :  { %v1078_v5 = vrot.slane %v1075_v4, 2 }
 0x92c   :  { %1100 = vrot.lane.b32.xlu0 %v1078_v5, %s1703_s9  ;;  %v1080_v6 = vadd.f32 %v1078_v5, %v2332_v39 }
 0x92e   :  { %v1547_v7 = vmul.f32 -1.442695, %v1080_v6 }
 0x930   :  { %1666 = vpow2.f32 %v1547_v7 }
 0x936   :  { %v1667_v8 = vpop.eup %1666 }
 0x937   :  { %v1084_v9 = vadd.f32 1.0, %v1667_v8 }
 0x939   :  { %1668 = vrcp.f32 %v1084_v9  ;;  %v1096_v15 = vand.u32 2147483648, %v1084_v9  ;;  %vm1090_vm15 = vweird.f32 %v1084_v9  ;;  %v1094_v16 = vand.u32 2147483647, %v1084_v9 }
 0x93b   :  { %v1097_v17 = vor.u32 1.1754944e-38, %v1096_v15  ;;  %vm1095_vm2 = vcmp.eq.f32.partialorder %v1094_v16, 8.507059e+37 }
 0x93f   :  { %v1669_v10 = vpop.eup %1668 }
 0x940   :  { %v1086_v11 = vmul.f32 %v1669_v10, %v1084_v9  ;;  %vm1091_vm14 = vweird.f32 %v1669_v10 }
 0x941   :  { %vm1092_vm1 = vmor %vm1090_vm15, %vm1091_vm14 }
 0x942   :  { %v1087_v12 = vsub.f32 1.0, %v1086_v11 }
 0x944   :  { %v1088_v13 = vmul.f32 %v1669_v10, %v1087_v12 }
 0x946   :  { %v1089_v14 = vadd.f32 %v1669_v10, %v1088_v13 }
 0x948   :  { %v1093_v35 = vsel %vm1092_vm1, %v1669_v10, %v1089_v14 }
 0x949   :  { %v1098_v56 = vsel %vm1095_vm2, %v1097_v17, %v1093_v35 }
 0x94a   :  { %v1110_v23 = vsub.f32 1.0, %v1098_v56  ;;  %v1118_v25 = vmul.f32 %v1116_v22, %v1098_v56 }
 0x99e   :  { %v1101_v59 = vpop.permute.xlu0 %1100 }
 0x99f   :  { %v1103_v60 = vmul.f32 %v1101_v59, %v1098_v56 }
 0x9a1   :  { %1105 = vrot.lane.b32.xlu1 %v1103_v60, %s1704_s8 }
 0xa13   :  { %v1106_v62 = vpop.permute.xlu1 %1105 }
 0xa14   :  { %v1108_v18 = vadd.f32 %v1106_v62, %v2332_v39 }
 0xa16   :  { %1670 = vtanh.f32 %v1108_v18 }
 0xa1c   :  { %v1671_v19 = vpop.eup %1670 }
 0xa1d   :  { %1112 = vrot.lane.b32.xlu2 %v1671_v19, %s1705_s10 }
 0xa77   :  { %v1113_v24 = vpop.permute.xlu2 %1112 }
 0xa78   :  { %v1115_v39 = vmul.f32 %v1113_v24, %v1110_v23 }
 0xa7a   :  { %v1119_v26 = vadd.f32 %v1118_v25, %v1115_v39 }
 0xa7c   :  { %v1127_v27 = vrot.slane %v1119_v26, 6 }
 0xa7e   :  { %1128 = vrot.lane.b32.xlu0 %v1127_v27, %s1705_s10 }
 0xaf0   :  { %v1129_v28 = vpop.permute.xlu0 %1128 }
 0xaf1   :  { %1549 = vmatmul.msk.f32.vlgmr.msra.gmra.mxu3 %vm847_vm5, %v1129_v28 }
 0xb74   :  { %v1152_v30 = vpop.f32.mrf.mxu3 }
 0xb75   :  { %v1153_v31 = vadd.f32 %v1647_v29, %v1152_v30 }
 0xb77   :  { %v1156_v32 = vsel %vm1155_vm3, %v1153_v31, -inf }
 0xb78   :  { %1157 = vmax.xlane.f32.xlu1 %v1156_v32 }
 0xbeb   :  { %v1158_v33 = vpop.xlane.xlu1 %1157 }
 0xbec   :  { %v1159_v34 = vsub.f32 %v1153_v31, %v1158_v33 }
 0xbee   :  { %v1160_v36 = vmul.f32 1.442695, %v1159_v34 }
 0xbf0   :  { %1672 = vpow2.f32 %v1160_v36 }
 0xbf6   :  { %v1673_v37 = vpop.eup %1672 }
 0xbf7   :  { %v1162_v38 = vsel %vm1155_vm3, %v1673_v37, 0.0 }
 0xbf8   :  { %1163 = vadd.xlane.f32.xlu2 %v1162_v38 }
 0xc6b   :  { %v1164_v40 = vpop.xlane.xlu2 %1163 }
 0xc6c   :  { %1674 = vlog2.f32 %v1164_v40 }
 0xc72   :  { %v1675_v41 = vpop.eup %1674 }
 0xc73   :  { %v1166_v42 = vmul.f32 0.6931472, %v1675_v41 }
 0xc75   :  { %v1167_v43 = vsub.f32 %v1159_v34, %v1166_v42 }
 0xc77   :  { %1168 = vst.msk [vmem:[#allocation2] sm:$0x3] %vm1155_vm3, %v1167_v43 }
 0xc78   :  { %1179 = dma.vmem_to_hbm [thread:$0]  %s1175_s2, 32, %s1177_s3, [#allocation3]  }
 0xc79   :  { %1700 = dma.done.wait [#allocation3], 32  }
 0xc7a   :  { %1701 = vsyncadd [#allocation3], 4294967264 }
 0xc7b   :  { %1184 = vsyncpa [#allocation3], 1 }

</bundles_post_ra>
